<compile_context>
chip_gen: v5e
topology: v5e:2x2
jax: 0.10.0
libtpu: 0.0.40
codegen_flags: <defaults>
</compile_context>

<pallas_src>
import math
import functools

import jax
import jax.numpy as jnp
from jax.experimental import pallas as pl
from jax.experimental.pallas import tpu as pltpu

# --- module hyper-parameters (from gpt_dev.py) ---
BLOCK_SIZE = 32          # max sequence length (causal mask size)
N_EMBD = 64              # embedding dim
NUM_HEADS = 4
HEAD_SIZE = 16           # head_size * num_heads == n_embd
DROPOUT = 0.0            # dropout prob is 0.0 -> identity at all times


def _mha_kernel(x_ref, wqkv_ref, bqkv_ref, wp_ref, bp_ref, mask_ref, out_ref,
                *, batch_block, T, num_heads, head_size, n_embd):
    """One grid step == `batch_block` batch elements. Everything fits in VMEM."""
    Bb, H, D, C = batch_block, num_heads, head_size, n_embd
    HD = H * D
    M = Bb * T

    # Fused Q/K/V projection: single matmul for all heads and all batches in the block.
    x = x_ref[...].reshape(M, C)                      # leading-dim collapse only
    qkv = jnp.dot(x, wqkv_ref[...],
                  preferred_element_type=jnp.float32) + bqkv_ref[...]
    q = qkv[:, :HD]          # already scaled by n_embd**-0.5 (folded into wq/bq)
    k = qkv[:, HD:2 * HD]
    v = qkv[:, 2 * HD:]

    wp = wp_ref[...]         # (H*D, C)
    bp = bp_ref[...]         # (1, C)
    mask = mask_ref[...]     # (T, T) additive causal mask: 0 on/below diag, -inf above

    for b in range(Bb):                               # static unroll over batches in block
        rows = slice(b * T, (b + 1) * T)
        acc = None                                    # running (T, C) output projection
        for h in range(H):                            # static unroll over heads
            cols = slice(h * D, (h + 1) * D)
            qh = q[rows, cols]
            kh = k[rows, cols]
            vh = v[rows, cols]

            s = jnp.dot(qh, kh.T, preferred_element_type=jnp.float32) + mask
            m = jnp.max(s, axis=-1, keepdims=True)
            p = jnp.exp(s - m)
            inv = pl.reciprocal(jnp.sum(p, axis=-1, keepdims=True), approx=True)
            oh = jnp.dot(p * inv, vh, preferred_element_type=jnp.float32)
            # dropout(p=0.0) on the attention weights and on the output is the identity.

            # Fold the per-head concat into the output projection:
            #   concat_h(head_h) @ Wp == sum_h head_h @ Wp[h*D:(h+1)*D, :]
            contrib = jnp.dot(oh, wp[cols, :], preferred_element_type=jnp.float32)
            acc = contrib if acc is None else acc + contrib

        out_ref[b] = (acc + bp).astype(out_ref.dtype)


def multi_head_attention(x, fused_params, *, batch_block=1):
    """x: (B, T, C) float32.  fused_params: output of fuse_params()."""
    B, T, C = x.shape
    assert B % batch_block == 0, "batch_block must divide the batch"
    wqkv = fused_params["wqkv"]
    bqkv = fused_params["bqkv"]
    wp = fused_params["wp"]
    bp = fused_params["bp"]
    mask = fused_params["mask"][:T, :T]

    kernel = functools.partial(
        _mha_kernel, batch_block=batch_block, T=T,
        num_heads=NUM_HEADS, head_size=HEAD_SIZE, n_embd=C)

    def resident(arr):
        # Constant block index -> fetched into VMEM once, not re-DMA'd across steps.
        nd = arr.ndim
        return pl.BlockSpec(arr.shape, lambda g, _nd=nd: (0,) * _nd)

    return pl.pallas_call(
        kernel,
        out_shape=jax.ShapeDtypeStruct((B, T, C), x.dtype),
        grid=(B // batch_block,),
        in_specs=[
            pl.BlockSpec((batch_block, T, C), lambda g: (g, 0, 0)),   # x
            resident(wqkv), resident(bqkv),
            resident(wp), resident(bp),
            resident(mask),
        ],
        out_specs=pl.BlockSpec((batch_block, T, C), lambda g: (g, 0, 0)),
        compiler_params=pltpu.CompilerParams(
            dimension_semantics=("parallel",)),
    )(x, wqkv, bqkv, wp, bp, mask)


def init_params(key):
    """Deterministic synthetic weights with the shapes nn.Linear would create.

    Per-head (head_size, n_embd) weights are concatenated along the output axis
    and stored as (n_embd, num_heads*head_size) so the math is x @ W + b.
    """
    keys = jax.random.split(key, 8)
    hcat = NUM_HEADS * HEAD_SIZE  # == 64

    def u(k, shape, fan_in):
        bound = 1.0 / math.sqrt(fan_in)
        return jax.random.uniform(k, shape, jnp.float32, -bound, bound)

    return {
        "wq": u(keys[0], (N_EMBD, hcat), N_EMBD),
        "bq": u(keys[1], (1, hcat), N_EMBD),
        "wk": u(keys[2], (N_EMBD, hcat), N_EMBD),
        "bk": u(keys[3], (1, hcat), N_EMBD),
        "wv": u(keys[4], (N_EMBD, hcat), N_EMBD),
        "bv": u(keys[5], (1, hcat), N_EMBD),
        "wp": u(keys[6], (hcat, N_EMBD), hcat),
        "bp": u(keys[7], (1, N_EMBD), hcat),
    }


def fuse_params(params):
    """One-time param prep: fuse QKV weights, fold the n_embd**-0.5 score scale into
    the query projection, and precompute the additive causal mask."""
    scale = N_EMBD ** (-0.5)   # reference scales by C**-0.5 with C = n_embd (not head_size)
    wqkv = jnp.concatenate(
        [params["wq"] * scale, params["wk"], params["wv"]], axis=1)
    bqkv = jnp.concatenate(
        [params["bq"] * scale, params["bk"], params["bv"]], axis=1)
    tril = jnp.tril(jnp.ones((BLOCK_SIZE, BLOCK_SIZE), dtype=bool))
    mask = jnp.where(tril, 0.0, -jnp.inf).astype(jnp.float32)
    return {"wqkv": wqkv, "bqkv": bqkv,
            "wp": params["wp"], "bp": params["bp"], "mask": mask}


def reference_mha(x, params):
    """Pure-JAX reference matching the PyTorch forward semantics."""
    B, T, C = x.shape
    scale = C ** (-0.5)
    q = x @ params["wq"] + params["bq"]
    k = x @ params["wk"] + params["bk"]
    v = x @ params["wv"] + params["bv"]

    tril = jnp.tril(jnp.ones((T, T), dtype=bool))
    outs = []
    for h in range(NUM_HEADS):
        sl = slice(h * HEAD_SIZE, (h + 1) * HEAD_SIZE)
        qh, kh, vh = q[..., sl], k[..., sl], v[..., sl]
        wei = jnp.einsum("btd,bsd->bts", qh, kh) * scale
        wei = jnp.where(tril, wei, -jnp.inf)
        wei = jax.nn.softmax(wei, axis=-1)
        outs.append(jnp.einsum("bts,bsd->btd", wei, vh))
    cat = jnp.concatenate(outs, axis=-1)
    return cat @ params["wp"] + params["bp"]


if __name__ == "__main__":
    key = jax.random.PRNGKey(0)
    k_param, k_x = jax.random.split(key)

    params = init_params(k_param)
    fused = fuse_params(params)   # one-time transform (scale fold + QKV fuse + mask)

    B, T, C = 2, BLOCK_SIZE, N_EMBD   # (2, 32, 64)
    x = jax.random.normal(k_x, (B, T, C), dtype=jnp.float32)

    # batch_block=1 keeps 2 "parallel" grid steps: one batch per TensorCore on v7x,
    # and only 2 cheap steps on single-TC v5e/v6e.  Raise batch_block for larger B.
    out = multi_head_attention(x, fused, batch_block=1)
    out = jax.block_until_ready(out)

    ref = reference_mha(x, params)
    assert out.shape == (B, T, C)
    # 2e-3 tolerance leaves headroom for the EUP approximate-reciprocal softmax
    # normalization (observed error is far smaller); real bugs show up as >>1e-2.
    assert jnp.allclose(out, ref, atol=2e-3, rtol=2e-3), "mismatch vs reference"

    print("KERNEL_OK")
</pallas_src>

<mosaic_0001>
module attributes {stable_mosaic.version = 11 : i64} {
  func.func @_mha_kernel(%arg0: i32, %arg1: memref<1x32x64xf32, #tpu.memory_space<vmem>>, %arg2: memref<64x192xf32, #tpu.memory_space<vmem>>, %arg3: memref<1x192xf32, #tpu.memory_space<vmem>>, %arg4: memref<64x64xf32, #tpu.memory_space<vmem>>, %arg5: memref<1x64xf32, #tpu.memory_space<vmem>>, %arg6: memref<32x32xf32, #tpu.memory_space<vmem>>, %arg7: memref<1x32x64xf32, #tpu.memory_space<vmem>>) attributes {dimension_semantics = [#tpu.dimension_semantics<parallel>], iteration_bounds = array<i64: 2>, scalar_prefetch = 0 : i64, scratch_operands = 0 : i64, tpu.core_type = #tpu.core_type<tc>, window_params = [{transform_indices = @transform_0, window_bounds = array<i64: 1, 32, 64>}, {pipeline_mode = #tpu.pipeline_mode<synchronous>, transform_indices = @transform_1, window_bounds = array<i64: 64, 192>}, {pipeline_mode = #tpu.pipeline_mode<synchronous>, transform_indices = @transform_2, window_bounds = array<i64: 1, 192>}, {pipeline_mode = #tpu.pipeline_mode<synchronous>, transform_indices = @transform_3, window_bounds = array<i64: 64, 64>}, {pipeline_mode = #tpu.pipeline_mode<synchronous>, transform_indices = @transform_4, window_bounds = array<i64: 1, 64>}, {pipeline_mode = #tpu.pipeline_mode<synchronous>, transform_indices = @transform_5, window_bounds = array<i64: 32, 32>}, {transform_indices = @transform_6, window_bounds = array<i64: 1, 32, 64>}]} {
    %c0 = arith.constant 0 : index
    %c0_0 = arith.constant 0 : index
    %c0_1 = arith.constant 0 : index
    %0 = vector.load %arg1[%c0, %c0_0, %c0_1] : memref<1x32x64xf32, #tpu.memory_space<vmem>>, vector<1x32x64xf32>
    %1 = vector.shape_cast %0 : vector<1x32x64xf32> to vector<32x64xf32>
    %c0_2 = arith.constant 0 : index
    %c0_3 = arith.constant 0 : index
    %2 = vector.load %arg2[%c0_2, %c0_3] : memref<64x192xf32, #tpu.memory_space<vmem>>, vector<64x192xf32>
    %cst = arith.constant dense<0.000000e+00> : vector<32x192xf32>
    %3 = tpu.matmul %1, %2, %cst {dimension_numbers = #tpu.dot_dimension_numbers<[1], [0], [0], [1], [0, 0, 1, 1], [], []>} : vector<32x64xf32>, vector<64x192xf32>, vector<32x192xf32> -> vector<32x192xf32>
    %c0_4 = arith.constant 0 : index
    %c0_5 = arith.constant 0 : index
    %4 = vector.load %arg3[%c0_4, %c0_5] : memref<1x192xf32, #tpu.memory_space<vmem>>, vector<1x192xf32>
    %5 = vector.broadcast %4 : vector<1x192xf32> to vector<32x192xf32>
    %6 = arith.addf %3, %5 : vector<32x192xf32>
    %7 = vector.extract_strided_slice %6 {offsets = [0, 0], sizes = [32, 64], strides = [1, 1]} : vector<32x192xf32> to vector<32x64xf32>
    %8 = vector.extract_strided_slice %6 {offsets = [0, 64], sizes = [32, 64], strides = [1, 1]} : vector<32x192xf32> to vector<32x64xf32>
    %9 = vector.extract_strided_slice %6 {offsets = [0, 128], sizes = [32, 64], strides = [1, 1]} : vector<32x192xf32> to vector<32x64xf32>
    %c0_6 = arith.constant 0 : index
    %c0_7 = arith.constant 0 : index
    %10 = vector.load %arg4[%c0_6, %c0_7] : memref<64x64xf32, #tpu.memory_space<vmem>>, vector<64x64xf32>
    %c0_8 = arith.constant 0 : index
    %c0_9 = arith.constant 0 : index
    %11 = vector.load %arg5[%c0_8, %c0_9] : memref<1x64xf32, #tpu.memory_space<vmem>>, vector<1x64xf32>
    %c0_10 = arith.constant 0 : index
    %c0_11 = arith.constant 0 : index
    %12 = vector.load %arg6[%c0_10, %c0_11] : memref<32x32xf32, #tpu.memory_space<vmem>>, vector<32x32xf32>
    %13 = vector.extract_strided_slice %7 {offsets = [0, 0], sizes = [32, 16], strides = [1, 1]} : vector<32x64xf32> to vector<32x16xf32>
    %14 = vector.extract_strided_slice %8 {offsets = [0, 0], sizes = [32, 16], strides = [1, 1]} : vector<32x64xf32> to vector<32x16xf32>
    %15 = vector.extract_strided_slice %9 {offsets = [0, 0], sizes = [32, 16], strides = [1, 1]} : vector<32x64xf32> to vector<32x16xf32>
    %16 = tpu.transpose %14, [1, 0] : vector<32x16xf32> -> vector<16x32xf32>
    %cst_12 = arith.constant dense<0.000000e+00> : vector<32x32xf32>
    %17 = tpu.matmul %13, %16, %cst_12 {dimension_numbers = #tpu.dot_dimension_numbers<[1], [0], [0], [1], [0, 0, 1, 1], [], []>} : vector<32x16xf32>, vector<16x32xf32>, vector<32x32xf32> -> vector<32x32xf32>
    %18 = arith.addf %17, %12 : vector<32x32xf32>
    %cst_13 = arith.constant dense<0xFF800000> : vector<32xf32>
    %19 = vector.multi_reduction <maximumf>, %18, %cst_13 [1] : vector<32x32xf32> to vector<32xf32>
    %20 = vector.shape_cast %19 : vector<32xf32> to vector<32x1xf32>
    %21 = vector.broadcast %20 : vector<32x1xf32> to vector<32x32xf32>
    %22 = arith.subf %18, %21 : vector<32x32xf32>
    %23 = math.exp %22 : vector<32x32xf32>
    %cst_14 = arith.constant dense<0.000000e+00> : vector<32xf32>
    %24 = vector.multi_reduction <add>, %23, %cst_14 [1] : vector<32x32xf32> to vector<32xf32>
    %25 = vector.shape_cast %24 : vector<32xf32> to vector<32x1xf32>
    %26 = tpu.reciprocal %25 {approx = true} : vector<32x1xf32> -> vector<32x1xf32>
    %27 = vector.broadcast %26 : vector<32x1xf32> to vector<32x32xf32>
    %28 = arith.mulf %23, %27 : vector<32x32xf32>
    %cst_15 = arith.constant dense<0.000000e+00> : vector<32x16xf32>
    %29 = tpu.matmul %28, %15, %cst_15 {dimension_numbers = #tpu.dot_dimension_numbers<[1], [0], [0], [1], [0, 0, 1, 1], [], []>} : vector<32x32xf32>, vector<32x16xf32>, vector<32x16xf32> -> vector<32x16xf32>
    %30 = vector.extract_strided_slice %10 {offsets = [0, 0], sizes = [16, 64], strides = [1, 1]} : vector<64x64xf32> to vector<16x64xf32>
    %cst_16 = arith.constant dense<0.000000e+00> : vector<32x64xf32>
    %31 = tpu.matmul %29, %30, %cst_16 {dimension_numbers = #tpu.dot_dimension_numbers<[1], [0], [0], [1], [0, 0, 1, 1], [], []>} : vector<32x16xf32>, vector<16x64xf32>, vector<32x64xf32> -> vector<32x64xf32>
    %32 = vector.extract_strided_slice %7 {offsets = [0, 16], sizes = [32, 16], strides = [1, 1]} : vector<32x64xf32> to vector<32x16xf32>
    %33 = vector.extract_strided_slice %8 {offsets = [0, 16], sizes = [32, 16], strides = [1, 1]} : vector<32x64xf32> to vector<32x16xf32>
    %34 = vector.extract_strided_slice %9 {offsets = [0, 16], sizes = [32, 16], strides = [1, 1]} : vector<32x64xf32> to vector<32x16xf32>
    %35 = tpu.transpose %33, [1, 0] : vector<32x16xf32> -> vector<16x32xf32>
    %cst_17 = arith.constant dense<0.000000e+00> : vector<32x32xf32>
    %36 = tpu.matmul %32, %35, %cst_17 {dimension_numbers = #tpu.dot_dimension_numbers<[1], [0], [0], [1], [0, 0, 1, 1], [], []>} : vector<32x16xf32>, vector<16x32xf32>, vector<32x32xf32> -> vector<32x32xf32>
    %37 = arith.addf %36, %12 : vector<32x32xf32>
    %cst_18 = arith.constant dense<0xFF800000> : vector<32xf32>
    %38 = vector.multi_reduction <maximumf>, %37, %cst_18 [1] : vector<32x32xf32> to vector<32xf32>
    %39 = vector.shape_cast %38 : vector<32xf32> to vector<32x1xf32>
    %40 = vector.broadcast %39 : vector<32x1xf32> to vector<32x32xf32>
    %41 = arith.subf %37, %40 : vector<32x32xf32>
    %42 = math.exp %41 : vector<32x32xf32>
    %cst_19 = arith.constant dense<0.000000e+00> : vector<32xf32>
    %43 = vector.multi_reduction <add>, %42, %cst_19 [1] : vector<32x32xf32> to vector<32xf32>
    %44 = vector.shape_cast %43 : vector<32xf32> to vector<32x1xf32>
    %45 = tpu.reciprocal %44 {approx = true} : vector<32x1xf32> -> vector<32x1xf32>
    %46 = vector.broadcast %45 : vector<32x1xf32> to vector<32x32xf32>
    %47 = arith.mulf %42, %46 : vector<32x32xf32>
    %cst_20 = arith.constant dense<0.000000e+00> : vector<32x16xf32>
    %48 = tpu.matmul %47, %34, %cst_20 {dimension_numbers = #tpu.dot_dimension_numbers<[1], [0], [0], [1], [0, 0, 1, 1], [], []>} : vector<32x32xf32>, vector<32x16xf32>, vector<32x16xf32> -> vector<32x16xf32>
    %49 = vector.extract_strided_slice %10 {offsets = [16, 0], sizes = [16, 64], strides = [1, 1]} : vector<64x64xf32> to vector<16x64xf32>
    %cst_21 = arith.constant dense<0.000000e+00> : vector<32x64xf32>
    %50 = tpu.matmul %48, %49, %cst_21 {dimension_numbers = #tpu.dot_dimension_numbers<[1], [0], [0], [1], [0, 0, 1, 1], [], []>} : vector<32x16xf32>, vector<16x64xf32>, vector<32x64xf32> -> vector<32x64xf32>
    %51 = arith.addf %31, %50 : vector<32x64xf32>
    %52 = vector.extract_strided_slice %7 {offsets = [0, 32], sizes = [32, 16], strides = [1, 1]} : vector<32x64xf32> to vector<32x16xf32>
    %53 = vector.extract_strided_slice %8 {offsets = [0, 32], sizes = [32, 16], strides = [1, 1]} : vector<32x64xf32> to vector<32x16xf32>
    %54 = vector.extract_strided_slice %9 {offsets = [0, 32], sizes = [32, 16], strides = [1, 1]} : vector<32x64xf32> to vector<32x16xf32>
    %55 = tpu.transpose %53, [1, 0] : vector<32x16xf32> -> vector<16x32xf32>
    %cst_22 = arith.constant dense<0.000000e+00> : vector<32x32xf32>
    %56 = tpu.matmul %52, %55, %cst_22 {dimension_numbers = #tpu.dot_dimension_numbers<[1], [0], [0], [1], [0, 0, 1, 1], [], []>} : vector<32x16xf32>, vector<16x32xf32>, vector<32x32xf32> -> vector<32x32xf32>
    %57 = arith.addf %56, %12 : vector<32x32xf32>
    %cst_23 = arith.constant dense<0xFF800000> : vector<32xf32>
    %58 = vector.multi_reduction <maximumf>, %57, %cst_23 [1] : vector<32x32xf32> to vector<32xf32>
    %59 = vector.shape_cast %58 : vector<32xf32> to vector<32x1xf32>
    %60 = vector.broadcast %59 : vector<32x1xf32> to vector<32x32xf32>
    %61 = arith.subf %57, %60 : vector<32x32xf32>
    %62 = math.exp %61 : vector<32x32xf32>
    %cst_24 = arith.constant dense<0.000000e+00> : vector<32xf32>
    %63 = vector.multi_reduction <add>, %62, %cst_24 [1] : vector<32x32xf32> to vector<32xf32>
    %64 = vector.shape_cast %63 : vector<32xf32> to vector<32x1xf32>
    %65 = tpu.reciprocal %64 {approx = true} : vector<32x1xf32> -> vector<32x1xf32>
    %66 = vector.broadcast %65 : vector<32x1xf32> to vector<32x32xf32>
    %67 = arith.mulf %62, %66 : vector<32x32xf32>
    %cst_25 = arith.constant dense<0.000000e+00> : vector<32x16xf32>
    %68 = tpu.matmul %67, %54, %cst_25 {dimension_numbers = #tpu.dot_dimension_numbers<[1], [0], [0], [1], [0, 0, 1, 1], [], []>} : vector<32x32xf32>, vector<32x16xf32>, vector<32x16xf32> -> vector<32x16xf32>
    %69 = vector.extract_strided_slice %10 {offsets = [32, 0], sizes = [16, 64], strides = [1, 1]} : vector<64x64xf32> to vector<16x64xf32>
    %cst_26 = arith.constant dense<0.000000e+00> : vector<32x64xf32>
    %70 = tpu.matmul %68, %69, %cst_26 {dimension_numbers = #tpu.dot_dimension_numbers<[1], [0], [0], [1], [0, 0, 1, 1], [], []>} : vector<32x16xf32>, vector<16x64xf32>, vector<32x64xf32> -> vector<32x64xf32>
    %71 = arith.addf %51, %70 : vector<32x64xf32>
    %72 = vector.extract_strided_slice %7 {offsets = [0, 48], sizes = [32, 16], strides = [1, 1]} : vector<32x64xf32> to vector<32x16xf32>
    %73 = vector.extract_strided_slice %8 {offsets = [0, 48], sizes = [32, 16], strides = [1, 1]} : vector<32x64xf32> to vector<32x16xf32>
    %74 = vector.extract_strided_slice %9 {offsets = [0, 48], sizes = [32, 16], strides = [1, 1]} : vector<32x64xf32> to vector<32x16xf32>
    %75 = tpu.transpose %73, [1, 0] : vector<32x16xf32> -> vector<16x32xf32>
    %cst_27 = arith.constant dense<0.000000e+00> : vector<32x32xf32>
    %76 = tpu.matmul %72, %75, %cst_27 {dimension_numbers = #tpu.dot_dimension_numbers<[1], [0], [0], [1], [0, 0, 1, 1], [], []>} : vector<32x16xf32>, vector<16x32xf32>, vector<32x32xf32> -> vector<32x32xf32>
    %77 = arith.addf %76, %12 : vector<32x32xf32>
    %cst_28 = arith.constant dense<0xFF800000> : vector<32xf32>
    %78 = vector.multi_reduction <maximumf>, %77, %cst_28 [1] : vector<32x32xf32> to vector<32xf32>
    %79 = vector.shape_cast %78 : vector<32xf32> to vector<32x1xf32>
    %80 = vector.broadcast %79 : vector<32x1xf32> to vector<32x32xf32>
    %81 = arith.subf %77, %80 : vector<32x32xf32>
    %82 = math.exp %81 : vector<32x32xf32>
    %cst_29 = arith.constant dense<0.000000e+00> : vector<32xf32>
    %83 = vector.multi_reduction <add>, %82, %cst_29 [1] : vector<32x32xf32> to vector<32xf32>
    %84 = vector.shape_cast %83 : vector<32xf32> to vector<32x1xf32>
    %85 = tpu.reciprocal %84 {approx = true} : vector<32x1xf32> -> vector<32x1xf32>
    %86 = vector.broadcast %85 : vector<32x1xf32> to vector<32x32xf32>
    %87 = arith.mulf %82, %86 : vector<32x32xf32>
    %cst_30 = arith.constant dense<0.000000e+00> : vector<32x16xf32>
    %88 = tpu.matmul %87, %74, %cst_30 {dimension_numbers = #tpu.dot_dimension_numbers<[1], [0], [0], [1], [0, 0, 1, 1], [], []>} : vector<32x32xf32>, vector<32x16xf32>, vector<32x16xf32> -> vector<32x16xf32>
    %89 = vector.extract_strided_slice %10 {offsets = [48, 0], sizes = [16, 64], strides = [1, 1]} : vector<64x64xf32> to vector<16x64xf32>
    %cst_31 = arith.constant dense<0.000000e+00> : vector<32x64xf32>
    %90 = tpu.matmul %88, %89, %cst_31 {dimension_numbers = #tpu.dot_dimension_numbers<[1], [0], [0], [1], [0, 0, 1, 1], [], []>} : vector<32x16xf32>, vector<16x64xf32>, vector<32x64xf32> -> vector<32x64xf32>
    %91 = arith.addf %71, %90 : vector<32x64xf32>
    %92 = vector.broadcast %11 : vector<1x64xf32> to vector<32x64xf32>
    %93 = arith.addf %91, %92 : vector<32x64xf32>
    %c0_32 = arith.constant 0 : index
    %c0_33 = arith.constant 0 : index
    %c0_34 = arith.constant 0 : index
    %94 = vector.load %arg7[%c0_32, %c0_33, %c0_34] : memref<1x32x64xf32, #tpu.memory_space<vmem>>, vector<1x32x64xf32>
    %95 = vector.shape_cast %94 : vector<1x32x64xf32> to vector<32x64xf32>
    %96 = vector.shape_cast %93 : vector<32x64xf32> to vector<1x32x64xf32>
    tpu.vector_store %arg7[%c0_32, %c0_33, %c0_34], %96 {strides = array<i32>} : memref<1x32x64xf32, #tpu.memory_space<vmem>>, vector<1x32x64xf32>,
    return
  }
  func.func @transform_0(%arg0: i32) -> (i32, i32, i32) {
    %c0_i32 = arith.constant 0 : i32
    %c0_i32_0 = arith.constant 0 : i32
    %c0_i32_1 = arith.constant 0 : i32
    return %arg0, %c0_i32, %c0_i32_0 : i32, i32, i32
  }
  func.func @transform_1(%arg0: i32) -> (i32, i32) {
    %c0_i32 = arith.constant 0 : i32
    %c0_i32_0 = arith.constant 0 : i32
    %c0_i32_1 = arith.constant 0 : i32
    return %c0_i32, %c0_i32_0 : i32, i32
  }
  func.func @transform_2(%arg0: i32) -> (i32, i32) {
    %c0_i32 = arith.constant 0 : i32
    %c0_i32_0 = arith.constant 0 : i32
    %c0_i32_1 = arith.constant 0 : i32
    return %c0_i32, %c0_i32_0 : i32, i32
  }
  func.func @transform_3(%arg0: i32) -> (i32, i32) {
    %c0_i32 = arith.constant 0 : i32
    %c0_i32_0 = arith.constant 0 : i32
    %c0_i32_1 = arith.constant 0 : i32
    return %c0_i32, %c0_i32_0 : i32, i32
  }
  func.func @transform_4(%arg0: i32) -> (i32, i32) {
    %c0_i32 = arith.constant 0 : i32
    %c0_i32_0 = arith.constant 0 : i32
    %c0_i32_1 = arith.constant 0 : i32
    return %c0_i32, %c0_i32_0 : i32, i32
  }
  func.func @transform_5(%arg0: i32) -> (i32, i32) {
    %c0_i32 = arith.constant 0 : i32
    %c0_i32_0 = arith.constant 0 : i32
    %c0_i32_1 = arith.constant 0 : i32
    return %c0_i32, %c0_i32_0 : i32, i32
  }
  func.func @transform_6(%arg0: i32) -> (i32, i32, i32) {
    %c0_i32 = arith.constant 0 : i32
    %c0_i32_0 = arith.constant 0 : i32
    %c0_i32_1 = arith.constant 0 : i32
    return %arg0, %c0_i32, %c0_i32_0 : i32, i32, i32
  }
}

</mosaic_0001>

<bundles_post_ra>
// kernel: tpu_custom_call.1
= control target key start
LH: loop header
LB: loop body
LE: loop exit
PB: predicated region body
PF: predicated region fallthrough
CT: control target
= control target key end

     0   :  { %11 = vsyncpa [#allocation3], 0  ;;  %s2464_s0 = inlined_call_operand.hbm [shape: f32[2,32,64], index: 0, kind: input, shape index: {}]   ;;  %s2465_s1 = inlined_call_operand.hbm [shape: f32[64,192], index: 1, kind: input, shape index: {}]   ;;  %s2466_s2 = inlined_call_operand.hbm [shape: f32[1,192], index: 2, kind: input, shape index: {}]   ;;  %s2467_s3 = inlined_call_operand.hbm [shape: f32[64,64], index: 3, kind: input, shape index: {}]   ;;  %s2468_s4 = inlined_call_operand.vmem [shape: f32[1,64], index: 4, kind: input, shape index: {}]   ;;  %s2469_s5 = inlined_call_operand.hbm [shape: f32[32,32], index: 5, kind: input, shape index: {}]   ;;  %s2470_s6 = inlined_call_operand.hbm [shape: f32[2,32,64], index: 6, kind: output, shape index: {}]  }
   0x1   :  { %13 = vsyncpa [#allocation3 + $0x1], 0 }
   0x2   :  { %14 = vsyncpa [#allocation6], 0 }
   0x3   :  { %15 = vsyncpa [#allocation9], 0 }
   0x4   :  { %16 = vsyncpa [#allocation4], 0 }
   0x5   :  { %18 = vsyncpa [#allocation4 + $0x1], 0  ;;  %s1959_s21 = smov 0   ;;  %s1961_s22 = smov 0  }
   0x6   :  { %s1963_s23 = smov 0   ;;  %s1965_s24 = smov 0  }
   0x7 LB: > { %s1980_s25 = sadd.s32 4294967295, %s1905_s24   ;;  %s1378_s26 = sadd.s32 4294967294, %s1905_s24   ;;  %s1905_s24 = sphi %s1965_s24, %s2485_s24   ;;  %s1901_s23 = sphi %s1963_s23, %s2484_s23   ;;  %s1897_s22 = sphi %s1961_s22, %s2483_s22   ;;  %s1893_s21 = sphi %s1959_s21, %s2482_s21  }
   0x8   : > { %p44_p0 = scmp.ne.s32.totalorder %s1897_s22, %s1893_s21  ;;  %p45_p1 = scmp.eq.s32.totalorder %s1980_s25, 0 }
   0x9   : > { %p173_p2 = scmp.eq.s32.totalorder %s1980_s25, 1  ;;  %p179_p3 = scmp.eq.s32.totalorder %s1378_s26, 1 }
   0xa   : > { %p1989_p4 = por %p45_p1, %p44_p0  ;;  %p1379_p5 = scmp.ge.s32.totalorder %s1905_s24, 1 }
   0xb   : > { %p1994_p6 = por %p179_p3, %p44_p0  ;;  %p186_p7 = scmp.lt.s32.totalorder %s1905_s24, 3 }
   0xc   : > { %s197_s7 = sshll.u32 %s2465_s1, 4  ;;  %s1907_s9 = smov [#allocation5]   ;;  %s198_s7 = int_to_ptr.hbm [resolvable:$true] %s197_s7 }
   0xd   : > { %p2002_p8 = pnand %p1379_p5, %p186_p7  ;;  %s199_s10 = sshll.u32 %s1907_s9, 4  ;;  %s200_s10 = int_to_ptr.vmem [resolvable:$true] %s199_s10 }
   0xe   : > { %s223_s14 = sshll.u32 %s2467_s3, 4  ;;  %s1908_s15 = smov 256   ;;  %s224_s14 = int_to_ptr.hbm [resolvable:$true] %s223_s14 }
   0xf   : > { %p1506_p9 = pneg %p2002_p8  ;;  %s1909_s16 = smov 16  }
  0x10   : > { %s1910_s17 = smov [#allocation8]   ;;  %s2471_s19 = smov 128  }
  0x11   : > { %p2010_p10 = pnand %p1506_p9, %p45_p1  ;;  %s225_s18 = sshll.u32 %s1910_s17, 4  ;;  %s226_s18 = int_to_ptr.vmem [resolvable:$true] %s225_s18 }
  0x12   : > { %s2472_s20 = smov 8   ;;  %s212_s30 = sshll.u32 %s2466_s2, 4  ;;  %s213_s30 = int_to_ptr.hbm [resolvable:$true] %s212_s30 }
  0x13   : > { %1509 = dma.hbm_to_vmem [thread:$0]  (!%p2010_p10), %s198_s7, 2048, %s200_s10, [#allocation6], %s1908_s15, %s1908_s15, %s1909_s16  }
  0x14   : > { %1515 = dma.hbm_to_vmem [thread:$0]  (!%p2010_p10), %s224_s14, 1024, %s226_s18, [#allocation9], %s2471_s19, %s2471_s19, %s2472_s20  }
  0x15   : > { %s1913_s7 = smov [#allocation7]   ;;  %s240_s13 = sshll.u32 %s2469_s5, 4  ;;  %s241_s13 = int_to_ptr.hbm [resolvable:$true] %s240_s13 }
  0x16   : > { %s214_s9 = sshll.u32 %s1913_s7, 4  ;;  %s1914_s14 = smov [#allocation10]   ;;  %s215_s9 = int_to_ptr.vmem [resolvable:$true] %s214_s9 }
  0x17   : > { %1512 = dma.hbm_to_vmem [thread:$0]  (!%p2010_p10), %s213_s30, 32, %s215_s9, [#allocation6]  }
  0x18   : > { %s242_s15 = sshll.u32 %s1914_s14, 4  ;;  %s2039_s16 = sadd.s32 1, %s1905_s24   ;;  %s243_s15 = int_to_ptr.vmem [resolvable:$true] %s242_s15 }
  0x19   : > { %1518 = dma.hbm_to_vmem [thread:$0]  (!%p2010_p10), %s241_s13, 512, %s243_s15, [#allocation9], %s2471_s19, %s2471_s19, %s2472_s20  }
  0x1a   : > { %s31_s17 = sadd.s32 1, %s1901_s23  ;;  %s28_s18 = ssub.s32 %s1905_s24, %s2039_s16 }
  0x1b   : > { %p38_p12 = scmp.ne.s32.totalorder %s1901_s23, %s1897_s22  ;;  %p29_p13 = scmp.eq.s32.totalorder %s28_s18, 0 }
  0x1c   : > { %p39_p0 = scmp.eq.s32.totalorder %s1905_s24, 0  ;;  %p1531_p5 = scmp.lt.s32.totalorder %s1905_s24, 2 }
  0x1d   : > { %p2049_p3 = por %p173_p2, %p38_p12  ;;  %s256_s11 = sand.u32 1, %s1901_s23  }
  0x1e   : > { %s2055_s29 = scalar_select %p29_p13, %s1901_s23, %s31_s17  }
  0x1f   : > { %p40_p7 = por %p39_p0, %p38_p12  ;;  %s1385_s30 = sshll.u32 %s256_s11, 5 }
  0x20   : > { %s1472_s7 = sshll.u32 %s1905_s24, 5  ;;  %s260_s13 = scalar_lea.vmem [#allocation2], %s1385_s30 }
  0x21   : > { %s265_s12 = scalar_lea.hbm %s2464_s0, %s1472_s7  ;;  %s268_s14 = sshll.u32 %s260_s13, 4  ;;  %s269_s14 = int_to_ptr.vmem [resolvable:$true] %s268_s14 }
  0x22   : > { %s266_s15 = sshll.u32 %s265_s12, 4  ;;  %p2062_p2 = pnand %p1531_p5, %p40_p7  ;;  %s267_s15 = int_to_ptr.hbm [resolvable:$true] %s266_s15 }
  0x23   : > { %s257_s17 = scalar_lea.sflag [#allocation3], %s256_s11  ;;  %s1801_s19 = sshra.s32 %s267_s15, 4  ;;  %s1802_s19 = int_to_ptr.hbm [resolvable:$true] %s1801_s19 }
  0x24   : > { %s1803_s20 = scalar_lea.hbm %s1802_s19, 32  ;;  %p1805_p10 = pneg %p2062_p2 }
  0x25   : > { %p1804_p9 = scmp.ne.s32.totalorder %s1802_s19, %s1803_s20  ;;  %s1808_s9 = scalar_lea.hbm %s2464_s0, 64 }
  0x26   : > { %p1809_p0 = scmp.lt.s32.totalorder %s1802_s19, %s2464_s0  ;;  %p1810_p5 = scmp.lt.s32.totalorder %s1808_s9, %s1803_s20 }
  0x27   : > { %p1806_p12 = pnand %p1805_p10, %p1804_p9 }
  0x28   : > { %p1811_p7 = por %p1810_p5, %p1809_p0 }
  0x29   : > { %p1807_p13 = pneg %p1806_p12 }
  0x2b   : > { %p1812_p11 = pnand %p1811_p7, %p1807_p13 }
  0x2d   : > { %1815 = shalt.err (!%p1812_p11)
}
  0x2e   : > { %s2479_s11 = smov 8   ;;  %s2480_s13 = smov 128  }
  0x2f   : > { %1522 = dma.hbm_to_vmem [thread:$0]  (!%p2062_p2), %s267_s15, 512, %s269_s14, %s257_s17, %s2480_s13, %s2480_s13, %s2479_s11  }
  0x30   : > { %280 = sbr.rel (%p2002_p8) target bundleno = 1631 (0x65f), region = 44  ;;  %s2082_s7 = sand.u32 (!%p2002_p8), 1, %s1897_s22  }
  0x31   : > { %s1389_s19 = sshll.u32 (!%p2002_p8), %s2082_s7, 5  ;;  %s283_s20 = scalar_lea.sflag (!%p2002_p8), [#allocation3], %s2082_s7 }
  0x32   : > { %s2088_s30 = scalar_lea.vmem (!%p2002_p8), [#allocation2], %s1389_s19 }
  0x35   : > { %1876 = dma.done.wait (%p1989_p4), %s283_s20, 512  }
  0x36   : > { %1878 = vsyncadd (%p1989_p4), %s283_s20, 4294966784 }
  0x37   : > { %1880 = dma.done.wait (%p45_p1), [#allocation6], 2080  }
  0x38   : > { %1882 = vsyncadd (%p45_p1), [#allocation6], 4294965216 }
  0x39   : > { %1884 = dma.done.wait (%p45_p1), [#allocation9], 1536  }
  0x3a   : > { %1886 = vsyncadd (%p45_p1), [#allocation9], 4294965760  ;;  %v354_v0 = vld [vmem:[#allocation5 + $0x70] sm:$0xff]  ;;  %v352_v1 = vld [vmem:[#allocation5 + $0x60] sm:$0xff]  ;;  %vm362_vm0 = vcmask 523264   ;;  %s1915_s27 = smov 64  }
  0x3b   : > { %383 = vmatpush.msra.mxu0 %v354_v0  ;;  %1474 = vmatpush.msra.mxu1 %v354_v0  ;;  %v350_v2 = vld [vmem:[#allocation5 + $0x50] sm:$0xff]  ;;  %v348_v3 = vld [vmem:[#allocation5 + $0x40] sm:$0xff]  ;;  %v2113_v10 = vld [vmem:[%s2088_s30 + $0x8] sm:$0xff]  ;;  %vm458_vm1 = vcmask 130048   ;;  %vm504_vm2 = vcmask 261120   ;;  %s1916_s8 = smov 48  }
  0x3c   : > { %v346_v4 = vld [vmem:[#allocation5 + $0x30] sm:$0xff]  ;;  %v344_v5 = vld [vmem:[#allocation5 + $0x20] sm:$0xff]  ;;  %v2116_v11 = vld [vmem:[%s2088_s30 + $0x18] sm:$0xff]  ;;  %s1917_s14 = smov 112   ;;  %s1918_s15 = smov 16  }
  0x3d   : > { %384 = vmatpush.msra.mxu0 %v352_v1  ;;  %1475 = vmatpush.msra.mxu1 %v352_v1  ;;  %v342_v6 = vld [vmem:[#allocation5 + $0x10] sm:$0xff]  ;;  %v340_v7 = vld [vmem:[#allocation5] sm:$0xff]  ;;  %v355_v26 = vld [vmem:[#allocation5 + $0x78] sm:$0xff]  ;;  %s1919_s18 = smov 32   ;;  %s1920_s17 = smov 80  }
  0x3e   : > { %v2103_v8 = vld [vmem:[%s2088_s30] sm:$0xff]  ;;  %v2106_v9 = vld [vmem:[%s2088_s30 + $0x10] sm:$0xff]  ;;  %v353_v27 = vld [vmem:[#allocation5 + $0x68] sm:$0xff]  ;;  %s1921_s9 = smov 96   ;;  %s335_s11 = scalar_lea.vmem [#allocation11], %s1389_s19 }
  0x3f   : > { %385 = vmatpush.msra.mxu0 %v350_v2  ;;  %1476 = vmatpush.msra.mxu1 %v350_v2  ;;  %v2122_v14 = vld [vmem:[#allocation7] sm:$0x3]  ;;  %v351_v28 = vld [vmem:[#allocation5 + $0x58] sm:$0xff]  ;;  %v2149_v29 = vld [vmem:[#allocation10] sm:$0xff]  ;;  %s1473_s13 = sshll.u32 %s1980_s25, 5  ;;  %s1252_s25 = scalar_lea.sflag [#allocation4], %s2082_s7 }
  0x40   : > { %v358_v15 = vperm.slane %v2122_v14, 0  ;;  %v349_v30 = vld [vmem:[#allocation5 + $0x48] sm:$0xff]  ;;  %v347_v32 = vld [vmem:[#allocation5 + $0x38] sm:$0xff]  ;;  %s1263_s30 = scalar_lea.hbm %s2470_s6, %s1473_s13 }
  0x41   : > { %386 = vmatpush.msra.mxu0 %v348_v3  ;;  %1477 = vmatpush.msra.mxu1 %v348_v3  ;;  %v345_v34 = vld [vmem:[#allocation5 + $0x28] sm:$0xff]  ;;  %v343_v36 = vld [vmem:[#allocation5 + $0x18] sm:$0xff] }
  0x42   : > { %v2153_v37 = vld [vmem:[#allocation10 + $0x8] sm:$0xff]  ;;  %v2159_v42 = vld [vmem:[#allocation10 + $0x10] sm:$0xff]  ;;  %v2165_v46 = vld [vmem:[#allocation10 + $0x18] sm:$0xff] }
  0x43   : > { %387 = vmatpush.msra.mxu0 %v346_v4  ;;  %1478 = vmatpush.msra.mxu1 %v346_v4  ;;  %v341_v39 = vld [vmem:[#allocation5 + $0x8] sm:$0xff] }
  0x45   : > { %388 = vmatpush.msra.mxu0 %v344_v5  ;;  %1479 = vmatpush.msra.mxu1 %v344_v5 }
  0x47   : > { %389 = vmatpush.msra.mxu0 %v342_v6  ;;  %1480 = vmatpush.msra.mxu1 %v342_v6 }
  0x49   : > { %390 = vmatpush.msra.mxu0 %v340_v7  ;;  %1481 = vmatpush.msra.mxu1 %v340_v7 }
  0x4a   : > { %1395 = vmatmul.msk.f32.vlgmr.msra.gmra.mxu0 %vm362_vm0, %v2103_v8  ;;  %1397 = vmatmul.msk.f32.vlgmr.msra.gmra.mxu1 %vm362_vm0, %v2106_v9 }
  0x4b   : > { %412 = vmatpush.msrb.mxu1 %v355_v26 }
  0x4d   : > { %413 = vmatpush.msrb.mxu1 %v353_v27 }
  0x4f   : > { %414 = vmatpush.msrb.mxu1 %v351_v28 }
  0x51   : > { %415 = vmatpush.msrb.mxu1 %v349_v30 }
  0x52   : > { %1396 = vmatmul.msk.f32.gmra.mxu0 %vm362_vm0, %v2113_v10  ;;  %1398 = vmatmul.msk.f32.gmra.mxu1 %vm362_vm0, %v2116_v11 }
  0x53   : > { %416 = vmatpush.msrb.mxu1 %v347_v32 }
  0x55   : > { %417 = vmatpush.msrb.mxu1 %v345_v34 }
  0x57   : > { %418 = vmatpush.msrb.mxu1 %v343_v36 }
  0x59   : > { %419 = vmatpush.msrb.mxu1 %v341_v39 }
  0x5a   : > { %1399 = vmatmul.msk.f32.vlgmr.msrb.gmra.mxu1 %vm362_vm0, %v2103_v8 }
  0x62   : > { %1400 = vmatmul.msk.f32.gmra.mxu1 %vm362_vm0, %v2113_v10 }
  0x6a   : > { %1401 = vmatmul.msk.f32.gmra.mxu1 %vm362_vm0, %v2106_v9  ;;  %v359_v9 = vperm.slane %v2122_v14, 1 }
  0x72   : > { %1402 = vmatmul.msk.f32.gmra.mxu1 %vm362_vm0, %v2116_v11 }
  0xc7   : > { %v392_v12 = vpop.f32.mrf.mxu0  ;;  %v398_v13 = vpop.f32.mrf.mxu1 }
  0xc8   : > { %v2131_v20 = vadd.f32 %v392_v12, %v358_v15  ;;  %v2133_v21 = vadd.f32 %v398_v13, %v358_v15 }
  0xcf   : > { %v395_v16 = vpop.f32.mrf.mxu0  ;;  %v401_v17 = vpop.f32.mrf.mxu1 }
  0xd0   : > { %v2125_v18 = vadd.f32 %v395_v16, %v358_v15  ;;  %v2127_v19 = vadd.f32 %v401_v17, %v358_v15  ;;  %v434_v17 = vld [vmem:[#allocation8 + $0x8] sm:$0xff] }
  0xd2   : > { %456 = vrot.lane.b32.xlu0 %v2127_v19, %s1915_s27  ;;  %452 = vrot.lane.b32.xlu1 %v2125_v18, %s1915_s27 }
  0xd7   : > { %v421_v59 = vpop.f32.mrf.mxu1 }
  0xd8   : > { %v422_v15 = vadd.f32 %v421_v59, %v359_v9 }
  0xda   : > { %454 = vrot.lane.b32.xlu0 %v2133_v21, %s1915_s27  ;;  %450 = vrot.lane.b32.xlu1 %v2131_v20, %s1915_s27  ;;  %s1264_s27 = sshll.u32 %s335_s11, 4  ;;  %s1265_s27 = int_to_ptr.vmem [resolvable:$true] %s1264_s27 }
  0xdf   : > { %v424_v1 = vpop.f32.mrf.mxu1 }
  0xe0   : > { %v425_v13 = vadd.f32 %v424_v1, %v359_v9 }
  0xe2   : > { %v2212_v14 = vpack.i.bf16 %v422_v15, %v425_v13 }
  0xe7   : > { %v427_v6 = vpop.f32.mrf.mxu1 }
  0xe8   : > { %v428_v11 = vadd.f32 %v427_v6, %v359_v9 }
  0xef   : > { %v430_v10 = vpop.f32.mrf.mxu1 }
  0xf0   : > { %v431_v12 = vadd.f32 %v430_v10, %v359_v9 }
  0xf2   : > { %1482 = vmatpush.msra.mxu3 %v431_v12  ;;  %v2218_v16 = vpack.i.bf16 %v428_v11, %v431_v12 }
  0xf4   : > { %1483 = vmatpush.msra.mxu3 %v428_v11 }
  0xf6   : > { %1484 = vmatpush.msra.mxu3 %v425_v13 }
  0xf8   : > { %1485 = vmatpush.msra.mxu3 %v422_v15 }
 0x144   : > { %v457_v22 = vpop.permute.xlu0 %456  ;;  %v453_v23 = vpop.permute.xlu1 %452 }
 0x145   : > { %1403 = vmatpush.xpose.msk.msra.mxu2 %vm458_vm1, %v457_v22  ;;  %v433_v22 = vld [vmem:[#allocation8] sm:$0xff] }
 0x14c   : > { %v455_v24 = vpop.permute.xlu0 %454  ;;  %v451_v25 = vpop.permute.xlu1 %450 }
 0x14d   : > { %1404 = vmatpush.xpose.msk.msra.mxu2 %vm458_vm1, %v455_v24 }
 0x151   : > { %1405 = vmatpush.xpose.msk.msra.mxu2 %vm458_vm1, %v453_v23 }
 0x155   : > { %1406 = vmatpush.xpose.msk.msra.mxu2 %vm458_vm1, %v451_v25 }
 0x158   : > { %1407 = vmatmul.msk.f32.vlgmr.msra.gmra.mxu2 %vm458_vm1, %v2131_v20 }
 0x159   : > { %573 = vmatpush.msrb.mxu2 %v431_v12 }
 0x15b   : > { %574 = vmatpush.msrb.mxu2 %v428_v11 }
 0x15d   : > { %575 = vmatpush.msrb.mxu2 %v425_v13 }
 0x15f   : > { %576 = vmatpush.msrb.mxu2 %v422_v15 }
 0x160   : > { %1408 = vmatmul.msk.f32.gmra.mxu2 %vm458_vm1, %v2125_v18 }
 0x161   : > { %819 = vmatpush.msra.mxu2 %v434_v17 }
 0x163   : > { %820 = vmatpush.msra.mxu2 %v433_v22 }
 0x168   : > { %1409 = vmatmul.msk.f32.gmra.mxu2 %vm458_vm1, %v2133_v21 }
 0x170   : > { %1410 = vmatmul.msk.f32.gmra.mxu2 %vm458_vm1, %v2127_v19 }
 0x1db   : > { %v492_v31 = vpop.f32.mrf.mxu2 }
 0x1dc   : > { %v493_v33 = vadd.f32 %v492_v31, %v2149_v29 }
 0x1de   : > { %v505_v35 = vsel %vm504_vm2, %v493_v33, -inf }
 0x1df   : > { %506 = vmax.xlane.f32.xlu2 %v505_v35 }
 0x1e3   : > { %v495_v38 = vpop.f32.mrf.mxu2 }
 0x1e4   : > { %v496_v40 = vadd.f32 %v495_v38, %v2153_v37 }
 0x1e6   : > { %v508_v41 = vsel %vm504_vm2, %v496_v40, -inf }
 0x1e7   : > { %509 = vmax.xlane.f32.xlu2 %v508_v41 }
 0x1eb   : > { %v498_v43 = vpop.f32.mrf.mxu2 }
 0x1ec   : > { %v499_v44 = vadd.f32 %v498_v43, %v2159_v42 }
 0x1ee   : > { %v511_v45 = vsel %vm504_vm2, %v499_v44, -inf }
 0x1ef   : > { %512 = vmax.xlane.f32.xlu0 %v511_v45 }
 0x1f3   : > { %v501_v47 = vpop.f32.mrf.mxu2 }
 0x1f4   : > { %v502_v48 = vadd.f32 %v501_v47, %v2165_v46 }
 0x1f6   : > { %v514_v49 = vsel %vm504_vm2, %v502_v48, -inf }
 0x1f7   : > { %515 = vmax.xlane.f32.xlu1 %v514_v49 }
 0x203   : > { %602 = vrot.lane.b32.xlu0 %v2133_v21, %s1916_s8 }
 0x20b   : > { %590 = vrot.lane.b32.xlu0 %v2131_v20, %s1917_s14 }
 0x210   : > { %600 = vrot.lane.b32.xlu1 %v2125_v18, %s1916_s8 }
 0x213   : > { %594 = vrot.lane.b32.xlu0 %v2133_v21, %s1917_s14 }
 0x218   : > { %1051 = vrot.lane.b32.xlu1 %v2127_v19, %s1918_s15 }
 0x21b   : > { %846 = vrot.lane.b32.xlu0 %v2133_v21, %s1919_s18 }
 0x220   : > { %1049 = vrot.lane.b32.xlu1 %v2133_v21, %s1918_s15 }
 0x223   : > { %844 = vrot.lane.b32.xlu0 %v2125_v18, %s1919_s18 }
 0x228   : > { %596 = vrot.lane.b32.xlu1 %v2127_v19, %s1917_s14 }
 0x22b   : > { %842 = vrot.lane.b32.xlu0 %v2131_v20, %s1919_s18 }
 0x230   : > { %1037 = vrot.lane.b32.xlu1 %v2131_v20, %s1920_s17 }
 0x233   : > { %836 = vrot.lane.b32.xlu0 %v2125_v18, %s1921_s9 }
 0x238   : > { %1039 = vrot.lane.b32.xlu1 %v2125_v18, %s1920_s17 }
 0x23b   : > { %1043 = vrot.lane.b32.xlu0 %v2127_v19, %s1920_s17 }
 0x240   : > { %838 = vrot.lane.b32.xlu1 %v2133_v21, %s1921_s9 }
 0x252   : > { %v507_v50 = vpop.xlane.xlu2 %506 }
 0x253   : > { %v517_v51 = vsub.f32 %v493_v33, %v507_v50 }
 0x255   : > { %v521_v52 = vmul.f32 1.442695, %v517_v51 }
 0x257   : > { %1617 = vpow2.f32 %v521_v52 }
 0x25a   : > { %v510_v53 = vpop.xlane.xlu2 %509 }
 0x25b   : > { %v518_v54 = vsub.f32 %v496_v40, %v510_v53 }
 0x25d   : > { %v1618_v55 = vpop.eup %1617  ;;  %v523_v56 = vmul.f32 1.442695, %v518_v54 }
 0x25e   : > { %v529_v57 = vsel %vm504_vm2, %v1618_v55, 0.0 }
 0x25f   : > { %1619 = vpow2.f32 %v523_v56  ;;  %530 = vadd.xlane.f32.xlu2 %v529_v57 }
 0x262   : > { %v513_v58 = vpop.xlane.xlu0 %512 }
 0x263   : > { %v519_v60 = vsub.f32 %v499_v44, %v513_v58 }
 0x265   : > { %v1620_v61 = vpop.eup %1619  ;;  %v525_v62 = vmul.f32 1.442695, %v519_v60 }
 0x266   : > { %v532_v63 = vsel %vm504_vm2, %v1620_v61, 0.0 }
 0x267   : > { %1621 = vpow2.f32 %v525_v62  ;;  %533 = vadd.xlane.f32.xlu2 %v532_v63 }
 0x26a   : > { %v516_v0 = vpop.xlane.xlu1 %515 }
 0x26b   : > { %v520_v2 = vsub.f32 %v502_v48, %v516_v0 }
 0x26d   : > { %v1622_v3 = vpop.eup %1621  ;;  %v527_v4 = vmul.f32 1.442695, %v520_v2 }
 0x26e   : > { %v535_v5 = vsel %vm504_vm2, %v1622_v3, 0.0 }
 0x26f   : > { %1623 = vpow2.f32 %v527_v4  ;;  %536 = vadd.xlane.f32.xlu2 %v535_v5 }
 0x275   : > { %v1624_v7 = vpop.eup %1623  ;;  %v603_v31 = vpop.permute.xlu0 %602 }
 0x276   : > { %v538_v8 = vsel %vm504_vm2, %v1624_v7, 0.0 }
 0x277   : > { %539 = vadd.xlane.f32.xlu2 %v538_v8 }
 0x27d   : > { %v591_v34 = vpop.permute.xlu0 %590 }
 0x282   : > { %v601_v23 = vpop.permute.xlu1 %600 }
 0x285   : > { %v595_v39 = vpop.permute.xlu0 %594 }
 0x28d   : > { %v847_v41 = vpop.permute.xlu0 %846 }
 0x28f   : > { %604 = vrot.lane.b32.xlu2 %v2127_v19, %s1916_s8 }
 0x295   : > { %v845_v45 = vpop.permute.xlu0 %844 }
 0x297   : > { %598 = vrot.lane.b32.xlu2 %v2131_v20, %s1916_s8  ;;  %s1266_s8 = sshll.u32 %s1263_s30, 4  ;;  %s1267_s8 = int_to_ptr.hbm [resolvable:$true] %s1266_s8 }
 0x29d   : > { %v843_v49 = vpop.permute.xlu0 %842 }
 0x29f   : > { %592 = vrot.lane.b32.xlu2 %v2125_v18, %s1917_s14 }
 0x2a5   : > { %v837_v54 = vpop.permute.xlu0 %836 }
 0x2a7   : > { %848 = vrot.lane.b32.xlu2 %v2127_v19, %s1919_s18 }
 0x2ad   : > { %v1044_v6 = vpop.permute.xlu0 %1043 }
 0x2af   : > { %1047 = vrot.lane.b32.xlu2 %v2125_v18, %s1918_s15  ;;  %v1052_v18 = vpop.permute.xlu1 %1051 }
 0x2b7   : > { %1045 = vrot.lane.b32.xlu2 %v2131_v20, %s1918_s15  ;;  %v1050_v28 = vpop.permute.xlu1 %1049 }
 0x2bf   : > { %834 = vrot.lane.b32.xlu2 %v2131_v20, %s1921_s9  ;;  %v597_v48 = vpop.permute.xlu1 %596 }
 0x2c7   : > { %1041 = vrot.lane.b32.xlu2 %v2133_v21, %s1920_s17  ;;  %v1038_v51 = vpop.permute.xlu1 %1037 }
 0x2cf   : > { %840 = vrot.lane.b32.xlu2 %v2127_v19, %s1921_s9  ;;  %v1040_v53 = vpop.permute.xlu1 %1039 }
 0x2d2   : > { %v531_v24 = vpop.xlane.xlu2 %530 }
 0x2d3   : > { %1625 = vrcp.f32 %v531_v24 }
 0x2d7   : > { %v839_v56 = vpop.permute.xlu1 %838 }
 0x2d9   : > { %v1626_v25 = vpop.eup %1625 }
 0x2da   : > { %v534_v26 = vpop.xlane.xlu2 %533  ;;  %v545_v27 = vmul.f32 %v1626_v25, %v1618_v55 }
 0x2db   : > { %1627 = vrcp.f32 %v534_v26 }
 0x2dc   : > { %1411 = vmatmul.msk.f32.vlgmr.msrb.gmra.mxu2 %vm504_vm2, %v545_v27 }
 0x2dd   : > { %1451 = vmatpush.xpose.msk.msrb.mxu2 %vm458_vm1, %v1052_v18 }
 0x2e1   : > { %v1628_v20 = vpop.eup %1627  ;;  %1452 = vmatpush.xpose.msk.msrb.mxu2 %vm458_vm1, %v1050_v28 }
 0x2e2   : > { %v537_v21 = vpop.xlane.xlu2 %536  ;;  %v546_v30 = vmul.f32 %v1628_v20, %v1620_v61 }
 0x2e3   : > { %1629 = vrcp.f32 %v537_v21 }
 0x2e4   : > { %1412 = vmatmul.msk.f32.gmra.mxu2 %vm504_vm2, %v546_v30 }
 0x2e9   : > { %v1630_v19 = vpop.eup %1629 }
 0x2ea   : > { %v540_v32 = vpop.xlane.xlu2 %539  ;;  %v547_v33 = vmul.f32 %v1630_v19, %v1622_v3 }
 0x2eb   : > { %1631 = vrcp.f32 %v540_v32 }
 0x2ec   : > { %1413 = vmatmul.msk.f32.vlgmr.msra.gmra.mxu3 %vm504_vm2, %v547_v33 }
 0x2f1   : > { %v1632_v35 = vpop.eup %1631 }
 0x2f2   : > { %v605_v36 = vpop.permute.xlu2 %604  ;;  %v548_v38 = vmul.f32 %v1632_v35, %v1624_v7 }
 0x2f3   : > { %1415 = vmatpush.xpose.msk.msrb.mxu3 %vm458_vm1, %v605_v36 }
 0x2f4   : > { %1414 = vmatmul.msk.f32.gmra.mxu3 %vm504_vm2, %v548_v38 }
 0x2f7   : > { %1416 = vmatpush.xpose.msk.msrb.mxu3 %vm458_vm1, %v603_v31 }
 0x2fa   : > { %v599_v40 = vpop.permute.xlu2 %598 }
 0x2fb   : > { %1417 = vmatpush.xpose.msk.msrb.mxu3 %vm458_vm1, %v601_v23 }
 0x2ff   : > { %1418 = vmatpush.xpose.msk.msrb.mxu3 %vm458_vm1, %v599_v40 }
 0x302   : > { %1419 = vmatmul.msk.f32.vlgmr.msrb.gmra.mxu3 %vm458_vm1, %v591_v34  ;;  %v593_v43 = vpop.permute.xlu2 %592 }
 0x30a   : > { %1420 = vmatmul.msk.f32.gmra.mxu3 %vm458_vm1, %v593_v43  ;;  %v849_v44 = vpop.permute.xlu2 %848 }
 0x30b   : > { %1435 = vmatpush.xpose.msk.msra.mxu3 %vm458_vm1, %v849_v44 }
 0x30f   : > { %1436 = vmatpush.xpose.msk.msra.mxu3 %vm458_vm1, %v847_v41 }
 0x312   : > { %1421 = vmatmul.msk.f32.gmra.mxu3 %vm458_vm1, %v595_v39  ;;  %v1048_v47 = vpop.permute.xlu2 %1047 }
 0x313   : > { %1437 = vmatpush.xpose.msk.msra.mxu3 %vm458_vm1, %v845_v45  ;;  %1453 = vmatpush.xpose.msk.msrb.mxu2 %vm458_vm1, %v1048_v47 }
 0x317   : > { %1438 = vmatpush.xpose.msk.msra.mxu3 %vm458_vm1, %v843_v49 }
 0x31a   : > { %1422 = vmatmul.msk.f32.gmra.mxu3 %vm458_vm1, %v597_v48  ;;  %v1046_v50 = vpop.permute.xlu2 %1045 }
 0x31b   : > { %1454 = vmatpush.xpose.msk.msrb.mxu2 %vm458_vm1, %v1046_v50 }
 0x322   : > { %v835_v52 = vpop.permute.xlu2 %834 }
 0x323   : > { %1439 = vmatmul.msk.f32.vlgmr.msra.gmra.mxu3 %vm458_vm1, %v835_v52 }
 0x32a   : > { %v1042_v55 = vpop.permute.xlu2 %1041 }
 0x32b   : > { %1440 = vmatmul.msk.f32.gmra.mxu3 %vm458_vm1, %v837_v54 }
 0x332   : > { %v841_v57 = vpop.permute.xlu2 %840 }
 0x333   : > { %1441 = vmatmul.msk.f32.gmra.mxu3 %vm458_vm1, %v839_v56 }
 0x33b   : > { %1442 = vmatmul.msk.f32.gmra.mxu3 %vm458_vm1, %v841_v57 }
 0x35f   : > { %v578_v58 = vpop.f32.mrf.mxu2 }
 0x360   : > { %1431 = vmatmul.msk.f32.vlgmr.msra.gmra.mxu2 %vm458_vm1, %v578_v58 }
 0x367   : > { %v581_v59 = vpop.f32.mrf.mxu2 }
 0x368   : > { %1432 = vmatmul.msk.f32.gmra.mxu2 %vm458_vm1, %v581_v59 }
 0x36f   : > { %v584_v60 = vpop.f32.mrf.mxu3 }
 0x370   : > { %1433 = vmatmul.msk.f32.gmra.mxu2 %vm458_vm1, %v584_v60 }
 0x377   : > { %v587_v61 = vpop.f32.mrf.mxu3 }
 0x378   : > { %1434 = vmatmul.msk.f32.gmra.mxu2 %vm458_vm1, %v587_v61 }
 0x380   : > { %1455 = vmatmul.msk.f32.vlgmr.msrb.gmra.mxu2 %vm458_vm1, %v1038_v51 }
 0x385   : > { %v639_v62 = vpop.f32.mrf.mxu3 }
 0x386   : > { %v640_v63 = vadd.f32 %v639_v62, %v2149_v29 }
 0x388   : > { %1456 = vmatmul.msk.f32.gmra.mxu2 %vm458_vm1, %v1040_v53  ;;  %v651_v0 = vsel %vm504_vm2, %v640_v63, -inf }
 0x389   : > { %652 = vmax.xlane.f32.xlu1 %v651_v0 }
 0x38d   : > { %v642_v1 = vpop.f32.mrf.mxu3 }
 0x38e   : > { %v643_v2 = vadd.f32 %v642_v1, %v2153_v37 }
 0x390   : > { %1457 = vmatmul.msk.f32.gmra.mxu2 %vm458_vm1, %v1042_v55  ;;  %v654_v3 = vsel %vm504_vm2, %v643_v2, -inf }
 0x391   : > { %655 = vmax.xlane.f32.xlu0 %v654_v3 }
 0x395   : > { %v645_v4 = vpop.f32.mrf.mxu3 }
 0x396   : > { %v646_v5 = vadd.f32 %v645_v4, %v2159_v42 }
 0x398   : > { %1458 = vmatmul.msk.f32.gmra.mxu2 %vm458_vm1, %v1044_v6  ;;  %v657_v7 = vsel %vm504_vm2, %v646_v5, -inf }
 0x399   : > { %658 = vmax.xlane.f32.xlu2 %v657_v7 }
 0x39d   : > { %v648_v8 = vpop.f32.mrf.mxu3 }
 0x39e   : > { %v649_v9 = vadd.f32 %v648_v8, %v2165_v46 }
 0x3a0   : > { %v660_v10 = vsel %vm504_vm2, %v649_v9, -inf }
 0x3a1   : > { %661 = vmax.xlane.f32.xlu1 %v660_v10 }
 0x3a6   : > { %v883_v11 = vpop.f32.mrf.mxu3 }
 0x3a7   : > { %v2271_v12 = vadd.f32 %v883_v11, %v2149_v29 }
 0x3a9   : > { %v895_v13 = vsel %vm504_vm2, %v2271_v12, -inf }
 0x3aa   : > { %896 = vmax.xlane.f32.xlu2 %v895_v13 }
 0x3ae   : > { %v886_v15 = vpop.f32.mrf.mxu3 }
 0x3af   : > { %v887_v17 = vadd.f32 %v886_v15, %v2153_v37 }
 0x3b1   : > { %v898_v22 = vsel %vm504_vm2, %v887_v17, -inf }
 0x3b2   : > { %899 = vmax.xlane.f32.xlu0 %v898_v22 }
 0x3b6   : > { %v889_v23 = vpop.f32.mrf.mxu3 }
 0x3b7   : > { %v2278_v24 = vadd.f32 %v889_v23, %v2159_v42 }
 0x3b9   : > { %v901_v18 = vsel %vm504_vm2, %v2278_v24, -inf }
 0x3ba   : > { %902 = vmax.xlane.f32.xlu1 %v901_v18 }
 0x3be   : > { %v892_v41 = vpop.f32.mrf.mxu3 }
 0x3bf   : > { %v2307_v45 = vadd.f32 %v892_v41, %v2165_v46 }
 0x3c1   : > { %v904_v49 = vsel %vm504_vm2, %v2307_v45, -inf }
 0x3c2   : > { %1592 = vrot.lane.b32.xlu2 %v2212_v14, %s1917_s14 }
 0x3e3   : > { %v2284_v25 = vpop.f32.mrf.mxu2 }
 0x3eb   : > { %v2286_v26 = vpop.f32.mrf.mxu2 }
 0x3f3   : > { %v2288_v27 = vpop.f32.mrf.mxu2 }
 0x3fb   : > { %v2290_v28 = vpop.f32.mrf.mxu2 }
 0x3fc   : > { %v653_v20 = vpop.xlane.xlu1 %652 }
 0x3fd   : > { %v663_v21 = vsub.f32 %v640_v63, %v653_v20 }
 0x3ff   : > { %v667_v30 = vmul.f32 1.442695, %v663_v21 }
 0x401   : > { %1633 = vpow2.f32 %v667_v30 }
 0x403   : > { %v1086_v31 = vpop.f32.mrf.mxu2 }
 0x404   : > { %v2297_v34 = vadd.f32 %v1086_v31, %v2149_v29  ;;  %v656_v35 = vpop.xlane.xlu0 %655 }
 0x405   : > { %v664_v39 = vsub.f32 %v643_v2, %v656_v35 }
 0x406   : > { %v1098_v40 = vsel %vm504_vm2, %v2297_v34, -inf }
 0x407   : > { %v2292_v19 = vpop.eup %1633  ;;  %v669_v43 = vmul.f32 1.442695, %v664_v39 }
 0x408   : > { %v675_v32 = vsel %vm504_vm2, %v2292_v19, 0.0 }
 0x409   : > { %676 = vadd.xlane.f32.xlu0 %v675_v32  ;;  %1635 = vpow2.f32 %v669_v43 }
 0x40b   : > { %v1089_v33 = vpop.f32.mrf.mxu2 }
 0x40c   : > { %v2300_v36 = vadd.f32 %v1089_v33, %v2153_v37  ;;  %v659_v29 = vpop.xlane.xlu2 %658 }
 0x40d   : > { %v665_v48 = vsub.f32 %v646_v5, %v659_v29 }
 0x40e   : > { %v1101_v38 = vsel %vm504_vm2, %v2300_v36, -inf }
 0x40f   : > { %1102 = vmax.xlane.f32.xlu1 %v1101_v38  ;;  %v671_v50 = vmul.f32 1.442695, %v665_v48  ;;  %v2316_v51 = vpop.eup %1635 }
 0x410   : > { %v678_v52 = vsel %vm504_vm2, %v2316_v51, 0.0 }
 0x411   : > { %1099 = vmax.xlane.f32.xlu0 %v1098_v40  ;;  %1637 = vpow2.f32 %v671_v50 }
 0x413   : > { %v1092_v44 = vpop.f32.mrf.mxu2 }
 0x414   : > { %v2310_v47 = vadd.f32 %v1092_v44, %v2159_v42  ;;  %v662_v54 = vpop.xlane.xlu1 %661 }
 0x415   : > { %v666_v55 = vsub.f32 %v649_v9, %v662_v54 }
 0x416   : > { %v1104_v37 = vsel %vm504_vm2, %v2310_v47, -inf }
 0x417   : > { %1105 = vmax.xlane.f32.xlu2 %v1104_v37  ;;  %v2320_v42 = vpop.eup %1637  ;;  %v673_v56 = vmul.f32 1.442695, %v666_v55 }
 0x418   : > { %v681_v53 = vsel %vm504_vm2, %v2320_v42, 0.0 }
 0x419   : > { %905 = vmax.xlane.f32.xlu0 %v904_v49  ;;  %1639 = vpow2.f32 %v673_v56 }
 0x41b   : > { %v1095_v62 = vpop.f32.mrf.mxu2 }
 0x41c   : > { %v2336_v2 = vadd.f32 %v1095_v62, %v2165_v46 }
 0x41d   : > { %v897_v1 = vpop.xlane.xlu2 %896 }
 0x41e   : > { %v907_v4 = vsub.f32 %v2271_v12, %v897_v1  ;;  %v1107_v6 = vsel %vm504_vm2, %v2336_v2, -inf }
 0x41f   : > { %v2330_v61 = vpop.eup %1639 }
 0x420   : > { %v684_v0 = vsel %vm504_vm2, %v2330_v61, 0.0  ;;  %v911_v7 = vmul.f32 1.442695, %v907_v4 }
 0x421   : > { %679 = vadd.xlane.f32.xlu0 %v678_v52 }
 0x425   : > { %v900_v57 = vpop.xlane.xlu0 %899  ;;  %v1593_v13 = vpop.permute.xlu2 %1592 }
 0x426   : > { %v908_v58 = vsub.f32 %v887_v17, %v900_v57  ;;  %v1594_v29 = vunpack.i.l.bf16 %v1593_v13  ;;  %v1595_v48 = vunpack.i.h.bf16 %v1593_v13 }
 0x428   : > { %1587 = vrot.lane.b32.xlu1 %v2218_v16, %s1917_s14  ;;  %v913_v59 = vmul.f32 1.442695, %v908_v58  ;;  %s1845_s14 = sshra.s32 %s1267_s8, 4  ;;  %s1846_s14 = int_to_ptr.hbm [resolvable:$true] %s1845_s14 }
 0x429   : > { %682 = vadd.xlane.f32.xlu0 %v681_v53  ;;  %s1847_s15 = scalar_lea.hbm %s1846_s14, 32  ;;  %p1852_p11 = scmp.lt.s32.totalorder %s1846_s14, %s2470_s6 }
 0x42a   : > { %1641 = vpow2.f32 %v913_v59  ;;  %p1848_p1 = scmp.ne.s32.totalorder %s1846_s14, %s1847_s15 }
 0x42c   : > { %p1849_p4 = pnand %p1848_p1, %p2049_p3 }
 0x42d   : > { %v903_v60 = vpop.xlane.xlu1 %902 }
 0x42e   : > { %v909_v63 = vsub.f32 %v2278_v24, %v903_v60  ;;  %p1850_p8 = pneg %p1849_p4 }
 0x42f   : > { %1597 = vrot.lane.b32.xlu2 %v2218_v16, %s1920_s17 }
 0x430   : > { %v915_v3 = vmul.f32 1.442695, %v909_v63  ;;  %v2339_v5 = vpop.eup %1641 }
 0x431   : > { %v922_v8 = vsel %vm504_vm2, %v2339_v5, 0.0 }
 0x432   : > { %1643 = vpow2.f32 %v915_v3 }
 0x433   : > { %1645 = vpow2.f32 %v911_v7 }
 0x438   : > { %v2345_v9 = vpop.eup %1643 }
 0x439   : > { %v925_v46 = vsel %vm504_vm2, %v2345_v9, 0.0  ;;  %v2349_v10 = vpop.eup %1645 }
 0x43a   : > { %v919_v11 = vsel %vm504_vm2, %v2349_v10, 0.0 }
 0x43d   : > { %1607 = vrot.lane.b32.xlu0 %v2212_v14, %s1920_s17 }
 0x452   : > { %685 = vadd.xlane.f32.xlu1 %v684_v0 }
 0x458   : > { %1108 = vmax.xlane.f32.xlu2 %v1107_v6 }
 0x45a   : > { %923 = vadd.xlane.f32.xlu1 %v922_v8  ;;  %v435_v8 = vld [vmem:[#allocation8 + $0x10] sm:$0xff] }
 0x462   : > { %926 = vadd.xlane.f32.xlu1 %v925_v46 }
 0x467   : > { %920 = vadd.xlane.f32.xlu0 %v919_v11 }
 0x470   : > { %1602 = vrot.lane.b32.xlu2 %v2218_v16, %s1921_s9 }
 0x47c   : > { %v677_v12 = vpop.xlane.xlu0 %676 }
 0x482   : > { %v1103_v15 = vpop.xlane.xlu1 %1102 }
 0x483   : > { %v1111_v23 = vsub.f32 %v2300_v36, %v1103_v15 }
 0x484   : > { %v1100_v17 = vpop.xlane.xlu0 %1099 }
 0x485   : > { %v1110_v22 = vsub.f32 %v2297_v34, %v1100_v17  ;;  %v1116_v20 = vmul.f32 1.442695, %v1111_v23 }
 0x487   : > { %v1114_v24 = vmul.f32 1.442695, %v1110_v22 }
 0x489   : > { %1647 = vpow2.f32 %v1114_v24 }
 0x48a   : > { %v1106_v18 = vpop.xlane.xlu2 %1105  ;;  %1649 = vpow2.f32 %v1116_v20 }
 0x48b   : > { %v1112_v58 = vsub.f32 %v2310_v47, %v1106_v18 }
 0x48c   : > { %v906_v21 = vpop.xlane.xlu0 %905 }
 0x48d   : > { %v910_v31 = vsub.f32 %v2307_v45, %v906_v21 }
 0x48f   : > { %v2357_v30 = vpop.eup %1647  ;;  %v917_v33 = vmul.f32 1.442695, %v910_v31 }
 0x490   : > { %v1122_v16 = vsel %vm504_vm2, %v2357_v30, 0.0  ;;  %v2362_v34 = vpop.eup %1649 }
 0x491   : > { %1123 = vadd.xlane.f32.xlu0 %v1122_v16  ;;  %1651 = vpow2.f32 %v917_v33  ;;  %v1125_v38 = vsel %vm504_vm2, %v2362_v34, 0.0 }
 0x492   : > { %v1598_v32 = vpop.permute.xlu2 %1597  ;;  %1653 = vrcp.f32 %v677_v12 }
 0x493   : > { %v1599_v35 = vunpack.i.l.bf16 %v1598_v32  ;;  %v1600_v36 = vunpack.i.h.bf16 %v1598_v32 }
 0x494   : > { %v680_v41 = vpop.xlane.xlu0 %679 }
 0x495   : > { %1178 = vmatpush.msrb.mxu3 %v1599_v35  ;;  %1655 = vrcp.f32 %v680_v41 }
 0x497   : > { %1179 = vmatpush.msrb.mxu3 %v1600_v36  ;;  %v2366_v43 = vpop.eup %1651 }
 0x498   : > { %v1654_v45 = vpop.eup %1653  ;;  %v928_v37 = vsel %vm504_vm2, %v2366_v43, 0.0 }
 0x499   : > { %1126 = vadd.xlane.f32.xlu2 %v1125_v38  ;;  %v691_v49 = vmul.f32 %v1654_v45, %v2292_v19 }
 0x49a   : > { %v1588_v39 = vpop.permute.xlu1 %1587 }
 0x49b   : > { %v1589_v40 = vunpack.i.l.bf16 %v1588_v39  ;;  %v1590_v44 = vunpack.i.h.bf16 %v1588_v39  ;;  %v1656_v52 = vpop.eup %1655 }
 0x49c   : > { %v683_v50 = vpop.xlane.xlu0 %682  ;;  %v692_v53 = vmul.f32 %v1656_v52, %v2316_v51 }
 0x49d   : > { %735 = vmatpush.msrb.mxu0 %v1589_v40  ;;  %1657 = vrcp.f32 %v683_v50 }
 0x49f   : > { %736 = vmatpush.msrb.mxu0 %v1590_v44 }
 0x4a1   : > { %929 = vadd.xlane.f32.xlu2 %v928_v37  ;;  %737 = vmatpush.msrb.mxu0 %v1594_v29 }
 0x4a3   : > { %738 = vmatpush.msrb.mxu0 %v1595_v48  ;;  %v1658_v54 = vpop.eup %1657  ;;  %v438_v48 = vld [vmem:[#allocation8 + $0x28] sm:$0xff] }
 0x4a4   : > { %1423 = vmatmul.msk.f32.vlgmr.msrb.gmra.mxu0 %vm504_vm2, %v691_v49  ;;  %v693_v19 = vmul.f32 %v1658_v54, %v2320_v42  ;;  %v437_v49 = vld [vmem:[#allocation8 + $0x20] sm:$0xff] }
 0x4a5   : > { %1612 = vrot.lane.b32.xlu0 %v2212_v14, %s1921_s9  ;;  %v1118_v14 = vmul.f32 1.442695, %v1112_v58  ;;  %s1851_s9 = scalar_lea.hbm %s2470_s6, 64 }
 0x4a6   : > { %p1853_p2 = scmp.lt.s32.totalorder %s1851_s9, %s1847_s15 }
 0x4a7   : > { %1659 = vpow2.f32 %v1118_v14 }
 0x4a8   : > { %p1854_p9 = por %p1853_p2, %p1852_p11 }
 0x4aa   : > { %p1855_p10 = pnand %p1854_p9, %p1850_p8 }
 0x4ac   : > { %1424 = vmatmul.msk.f32.gmra.mxu0 %vm504_vm2, %v692_v53 }
 0x4ad   : > { %v2379_v60 = vpop.eup %1659 }
 0x4ae   : > { %v1128_v42 = vsel %vm504_vm2, %v2379_v60, 0.0 }
 0x4af   : > { %v1608_v55 = vpop.permute.xlu0 %1607 }
 0x4b0   : > { %v1609_v56 = vunpack.i.l.bf16 %v1608_v55  ;;  %v1610_v57 = vunpack.i.h.bf16 %v1608_v55 }
 0x4b2   : > { %1180 = vmatpush.msrb.mxu3 %v1609_v56 }
 0x4b4   : > { %1425 = vmatmul.msk.f32.gmra.mxu0 %vm504_vm2, %v693_v19  ;;  %1181 = vmatpush.msrb.mxu3 %v1610_v57 }
 0x4c5   : > { %v686_v59 = vpop.xlane.xlu1 %685 }
 0x4c6   : > { %1661 = vrcp.f32 %v686_v59 }
 0x4cb   : > { %v1109_v51 = vpop.xlane.xlu2 %1108 }
 0x4cc   : > { %v1662_v62 = vpop.eup %1661  ;;  %v1113_v63 = vsub.f32 %v2336_v2, %v1109_v51  ;;  %v436_v2 = vld [vmem:[#allocation8 + $0x18] sm:$0xff] }
 0x4cd   : > { %v694_v0 = vmul.f32 %v1662_v62, %v2330_v61  ;;  %778 = vmatpush.msra.mxu1 %v436_v2  ;;  %v924_v22 = vpop.xlane.xlu1 %923 }
 0x4ce   : > { %v1120_v1 = vmul.f32 1.442695, %v1113_v63 }
 0x4cf   : > { %1129 = vadd.xlane.f32.xlu0 %v1128_v42  ;;  %1426 = vmatmul.msk.f32.gmra.mxu0 %vm504_vm2, %v694_v0 }
 0x4d0   : > { %1663 = vpow2.f32 %v1120_v1  ;;  %779 = vmatpush.msra.mxu1 %v435_v8  ;;  %v1616_v1 = vld [vmem:[%s2468_s4] ss:$0 sm:$0xff] }
 0x4d2   : > { %1018 = vmatpush.msrb.mxu1 %v438_v48 }
 0x4d3   : > { %v1603_v47 = vpop.permute.xlu2 %1602 }
 0x4d4   : > { %v1604_v3 = vunpack.i.l.bf16 %v1603_v47  ;;  %v1605_v6 = vunpack.i.h.bf16 %v1603_v47  ;;  %1019 = vmatpush.msrb.mxu1 %v437_v49 }
 0x4d6   : > { %v2386_v4 = vpop.eup %1663  ;;  %975 = vmatpush.msra.mxu0 %v1604_v3 }
 0x4d7   : > { %v1131_v7 = vsel %vm504_vm2, %v2386_v4, 0.0 }
 0x4d8   : > { %1132 = vadd.xlane.f32.xlu1 %v1131_v7  ;;  %976 = vmatpush.msra.mxu0 %v1605_v6 }
 0x4da   : > { %v921_v61 = vpop.xlane.xlu0 %920 }
 0x504   : > { %v1124_v46 = vpop.xlane.xlu0 %1123 }
 0x505   : > { %1665 = vrcp.f32 %v1124_v46 }
 0x50b   : > { %v1666_v11 = vpop.eup %1665 }
 0x50c   : > { %v1138_v12 = vmul.f32 %v1666_v11, %v2357_v30  ;;  %v1127_v13 = vpop.xlane.xlu2 %1126  ;;  %v927_v30 = vpop.xlane.xlu1 %926 }
 0x50d   : > { %1667 = vrcp.f32 %v1127_v13 }
 0x50e   : > { %1459 = vmatmul.msk.f32.vlgmr.msrb.gmra.mxu3 %vm504_vm2, %v1138_v12  ;;  %1669 = vrcp.f32 %v921_v61 }
 0x50f   : > { %1671 = vrcp.f32 %v924_v22 }
 0x510   : > { %1673 = vrcp.f32 %v927_v30 }
 0x513   : > { %v1668_v15 = vpop.eup %1667 }
 0x514   : > { %v1139_v17 = vmul.f32 %v1668_v15, %v2362_v34  ;;  %v1670_v24 = vpop.eup %1669  ;;  %v930_v33 = vpop.xlane.xlu2 %929 }
 0x515   : > { %v935_v21 = vmul.f32 %v1670_v24, %v2349_v10  ;;  %v1672_v31 = vpop.eup %1671  ;;  %1675 = vrcp.f32 %v930_v33 }
 0x516   : > { %1460 = vmatmul.msk.f32.gmra.mxu3 %vm504_vm2, %v1139_v17  ;;  %v936_v32 = vmul.f32 %v1672_v31, %v2339_v5  ;;  %v1674_v35 = vpop.eup %1673  ;;  %v440_v5 = vld [vmem:[#allocation8 + $0x38] sm:$0xff] }
 0x517   : > { %v1613_v23 = vpop.permute.xlu0 %1612  ;;  %v937_v10 = vmul.f32 %v1674_v35, %v2345_v9 }
 0x518   : > { %v1614_v18 = vunpack.i.l.bf16 %v1613_v23  ;;  %v1615_v20 = vunpack.i.h.bf16 %v1613_v23 }
 0x51a   : > { %977 = vmatpush.msra.mxu0 %v1614_v18 }
 0x51b   : > { %v1676_v36 = vpop.eup %1675 }
 0x51c   : > { %978 = vmatpush.msra.mxu0 %v1615_v20  ;;  %v938_v39 = vmul.f32 %v1676_v36, %v2366_v43  ;;  %v439_v43 = vld [vmem:[#allocation8 + $0x30] sm:$0xff] }
 0x51d   : > { %1443 = vmatmul.msk.f32.vlgmr.msra.gmra.mxu0 %vm504_vm2, %v935_v21 }
 0x51e   : > { %1221 = vmatpush.msrb.mxu0 %v440_v5 }
 0x520   : > { %1222 = vmatpush.msrb.mxu0 %v439_v43 }
 0x521   : > { %v740_v16 = vpop.f32.mrf.mxu0 }
 0x522   : > { %1427 = vmatmul.msk.f32.vlgmr.msra.gmra.mxu1 %vm458_vm1, %v740_v16 }
 0x525   : > { %1444 = vmatmul.msk.f32.gmra.mxu0 %vm504_vm2, %v936_v32 }
 0x529   : > { %v743_v34 = vpop.f32.mrf.mxu0 }
 0x52a   : > { %1428 = vmatmul.msk.f32.gmra.mxu1 %vm458_vm1, %v743_v34 }
 0x52d   : > { %1445 = vmatmul.msk.f32.gmra.mxu0 %vm504_vm2, %v937_v10 }
 0x531   : > { %v746_v38 = vpop.f32.mrf.mxu0 }
 0x532   : > { %1429 = vmatmul.msk.f32.gmra.mxu1 %vm458_vm1, %v746_v38 }
 0x535   : > { %1446 = vmatmul.msk.f32.gmra.mxu0 %vm504_vm2, %v938_v39 }
 0x542   : > { %v1130_v40 = vpop.xlane.xlu0 %1129 }
 0x543   : > { %1677 = vrcp.f32 %v1130_v40 }
 0x549   : > { %v1678_v41 = vpop.eup %1677 }
 0x54a   : > { %v1140_v44 = vmul.f32 %v1678_v41, %v2379_v60 }
 0x54b   : > { %v1133_v45 = vpop.xlane.xlu1 %1132 }
 0x54c   : > { %1679 = vrcp.f32 %v1133_v45  ;;  %v749_v9 = vpop.f32.mrf.mxu0  ;;  %1461 = vmatmul.msk.f32.gmra.mxu3 %vm504_vm2, %v1140_v44 }
 0x54d   : > { %1430 = vmatmul.msk.f32.gmra.mxu1 %vm458_vm1, %v749_v9 }
 0x552   : > { %v1680_v29 = vpop.eup %1679 }
 0x553   : > { %v1141_v37 = vmul.f32 %v1680_v29, %v2386_v4 }
 0x555   : > { %1462 = vmatmul.msk.f32.gmra.mxu3 %vm504_vm2, %v1141_v37 }
 0x591   : > { %v1183_v50 = vpop.f32.mrf.mxu3 }
 0x592   : > { %1463 = vmatmul.msk.f32.vlgmr.msrb.gmra.mxu0 %vm458_vm1, %v1183_v50 }
 0x599   : > { %v1186_v52 = vpop.f32.mrf.mxu3 }
 0x59a   : > { %v980_v53 = vpop.f32.mrf.mxu0  ;;  %1464 = vmatmul.msk.f32.gmra.mxu0 %vm458_vm1, %v1186_v52 }
 0x59b   : > { %1447 = vmatmul.msk.f32.vlgmr.msrb.gmra.mxu1 %vm458_vm1, %v980_v53 }
 0x59f   : > { %v781_v58 = vpop.f32.mrf.mxu1 }
 0x5a0   : > { %v823_v51 = vadd.f32 %v2284_v25, %v781_v58 }
 0x5a2   : > { %v983_v54 = vpop.f32.mrf.mxu0 }
 0x5a3   : > { %1448 = vmatmul.msk.f32.gmra.mxu1 %vm458_vm1, %v983_v54 }
 0x5a7   : > { %v784_v14 = vpop.f32.mrf.mxu1 }
 0x5a8   : > { %v826_v3 = vadd.f32 %v2286_v26, %v784_v14 }
 0x5aa   : > { %v986_v55 = vpop.f32.mrf.mxu0 }
 0x5ab   : > { %1449 = vmatmul.msk.f32.gmra.mxu1 %vm458_vm1, %v986_v55 }
 0x5af   : > { %v787_v59 = vpop.f32.mrf.mxu1 }
 0x5b0   : > { %v829_v8 = vadd.f32 %v2288_v27, %v787_v59 }
 0x5b2   : > { %v989_v56 = vpop.f32.mrf.mxu0 }
 0x5b3   : > { %1450 = vmatmul.msk.f32.gmra.mxu1 %vm458_vm1, %v989_v56 }
 0x5ca   : > { %v790_v60 = vpop.f32.mrf.mxu1 }
 0x5cb   : > { %v832_v15 = vadd.f32 %v2290_v28, %v790_v60 }
 0x5cf   : > { %v1189_v57 = vpop.f32.mrf.mxu3 }
 0x5d0   : > { %1465 = vmatmul.msk.f32.gmra.mxu0 %vm458_vm1, %v1189_v57 }
 0x5d8   : > { %v1192_v19 = vpop.f32.mrf.mxu3 }
 0x5d9   : > { %1466 = vmatmul.msk.f32.gmra.mxu0 %vm458_vm1, %v1192_v19 }
 0x60f   : > { %v1224_v62 = vpop.f32.mrf.mxu0 }
 0x617   : > { %v1227_v7 = vpop.f32.mrf.mxu0 }
 0x618   : > { %v1021_v63 = vpop.f32.mrf.mxu1 }
 0x619   : > { %v1033_v0 = vadd.f32 %v1021_v63, %v823_v51 }
 0x61b   : > { %v1236_v42 = vadd.f32 %v1224_v62, %v1033_v0 }
 0x61d   : > { %v1243_v47 = vadd.f32 %v1616_v1, %v1236_v42 }
 0x61f   : > { %1247 = vst.msk [vmem:[%s335_s11] sm:$0xff] %vm362_vm0, %v1243_v47 }
 0x620   : > { %v1024_v4 = vpop.f32.mrf.mxu1 }
 0x621   : > { %v1034_v6 = vadd.f32 %v1024_v4, %v826_v3 }
 0x623   : > { %v1237_v25 = vadd.f32 %v1227_v7, %v1034_v6 }
 0x625   : > { %v1244_v61 = vadd.f32 %v1616_v1, %v1237_v25 }
 0x627   : > { %1248 = vst.msk [vmem:[%s335_s11 + $0x8] sm:$0xff] %vm362_vm0, %v1244_v61 }
 0x628   : > { %v1027_v2 = vpop.f32.mrf.mxu1 }
 0x629   : > { %v1035_v46 = vadd.f32 %v1027_v2, %v829_v8 }
 0x630   : > { %v1030_v13 = vpop.f32.mrf.mxu1 }
 0x631   : > { %v1036_v17 = vadd.f32 %v1030_v13, %v832_v15 }
 0x64d   : > { %v1230_v11 = vpop.f32.mrf.mxu0 }
 0x64e   : > { %v1238_v12 = vadd.f32 %v1230_v11, %v1035_v46 }
 0x650   : > { %v1245_v26 = vadd.f32 %v1616_v1, %v1238_v12 }
 0x652   : > { %1249 = vst.msk [vmem:[%s335_s11 + $0x10] sm:$0xff] %vm362_vm0, %v1245_v26 }
 0x656   : > { %v1233_v27 = vpop.f32.mrf.mxu0 }
 0x657   : > { %v1239_v22 = vadd.f32 %v1233_v27, %v1036_v17 }
 0x659   : > { %v1246_v23 = vadd.f32 %v1616_v1, %v1239_v22 }
 0x65b   : > { %1250 = vst.msk [vmem:[%s335_s11 + $0x18] sm:$0xff] %vm362_vm0, %v1246_v23 }
 0x65c   : > { %1858 = shalt.err (!%p1855_p10)
}
 0x65d   : > { %s1922_s7 = smov 128   ;;  %s1923_s11 = smov 8  }
 0x65e   : > { %1504 = dma.vmem_to_hbm [thread:$0]  (%p2049_p3), %s1265_s27, 512, %s1267_s8, %s1252_s25, %s1922_s7, %s1922_s7, %s1923_s11  }
 0x65f PF: > { %s1281_s13 = sand.u32 1, %s1893_s21   ;;  %p2481_p12 = scmp.ge.s32.totalorder %s1905_s24, 2 }
 0x660   : > { %s1282_s19 = scalar_lea.sflag [#allocation4], %s1281_s13 }
 0x661   : > { %p1524_p13 = pnand %p2481_p12, %p1994_p6 }
 0x663   : > { %p1525_p0 = pneg %p1524_p13 }
 0x665   : > { %1888 = dma.done.wait (%p1525_p0), %s1282_s19, 512  }
 0x666   : > { %1890 = vsyncadd (%p1525_p0), %s1282_s19, 4294966784  ;;  %p21_p5 = scmp.ge.s32.totalorder %s2039_s16, 4   ;;  %s2482_s21 = smov %s1897_s22 }
 0x667   : > { %s2483_s22 = smov %s1901_s23  ;;  %s2484_s23 = smov %s2055_s29 }
 0x668   : > { %s2485_s24 = smov %s2039_s16  ;;  %23 = sbr.rel (!%p21_p5) target bundleno = 7 (0x7), region = 105 }
 0x66d   :  { %1288 = vsyncpa [#allocation3], 1 }
 0x66e   :  { %1290 = vsyncpa [#allocation3 + $0x1], 1 }
 0x66f   :  { %1291 = vsyncpa [#allocation6], 1 }
 0x670   :  { %1292 = vsyncpa [#allocation9], 1 }
 0x671   :  { %1293 = vsyncpa [#allocation4], 1 }
 0x672   :  { %1295 = vsyncpa [#allocation4 + $0x1], 1 }

</bundles_post_ra>
